<compile_context>
chip_gen: v7x
topology: tpu7x:2x2x1
jax: 0.10.0
libtpu: 0.0.40
codegen_flags: <defaults>
</compile_context>

<pallas_src>
import functools

import jax
import jax.numpy as jnp
from jax import lax
from jax.experimental import pallas as pl
from jax.experimental.pallas import tpu as pltpu


# --------------------------------------------------------------------------------------
# Fused encoder-layer kernel (one grid step == one batch element)
# --------------------------------------------------------------------------------------
def encoder_layer_kernel(x_ref, mask_ref, ln_ref, wqkv_ref, wo_ref,
                         c1w_ref, c2w_ref, bias_ref, o_ref,
                         *, num_heads, total_key_depth, total_value_depth,
                         filter_size, eps):
    f32 = jnp.float32
    bf16 = jnp.bfloat16

    x = x_ref[0].astype(f32)                     # (S, H), stays resident in VMEM
    seq, hidden = x.shape
    Dk, Dv, F = total_key_depth, total_value_depth, filter_size
    dk, dv = Dk // num_heads, Dv // num_heads

    ln = ln_ref[...]                             # (4, H): [g_mha, b_mha, g_ffn, b_ffn]

    def layer_norm(z, g, b):
        # PyTorch-module semantics: unbiased std (H-1), eps added to std (not var).
        mean = jnp.mean(z, axis=-1, keepdims=True)
        var = jnp.sum((z - mean) ** 2, axis=-1, keepdims=True) * (1.0 / (hidden - 1))
        inv = 1.0 / (jnp.sqrt(var) + eps)        # exact: tighter PyTorch parity
        return (z - mean) * inv * g + b

    # ---------------- pre-LN + multi-head self-attention + residual ----------------
    xn = layer_norm(x, ln[0:1], ln[1:2])
    # ONE fused lane-dense QKV matmul (query scale already folded into Wq columns).
    qkv = jnp.dot(xn.astype(bf16), wqkv_ref[...],
                  preferred_element_type=f32)    # (S, 2*Dk+Dv)

    mask_bias = mask_ref[0] * f32(-1e18)         # (1, S) additive key-mask bias

    ctx_heads = []
    for h in range(num_heads):                   # static unroll; lane slices are cheap
        qh = qkv[:, h * dk:(h + 1) * dk].astype(bf16)                     # (S, dk)
        kh = qkv[:, Dk + h * dk: Dk + (h + 1) * dk].astype(bf16)          # (S, dk)
        vh = qkv[:, 2 * Dk + h * dv: 2 * Dk + (h + 1) * dv].astype(bf16)  # (S, dv)

        logits = lax.dot_general(qh, kh, (((1,), (1,)), ((), ())),
                                 preferred_element_type=f32)              # (S, S)
        logits = logits + mask_bias
        logits = logits - jnp.max(logits, axis=-1, keepdims=True)
        p = jnp.exp(logits)
        p = p * pl.reciprocal(jnp.sum(p, axis=-1, keepdims=True), approx=True)
        ctx_heads.append(jnp.dot(p.astype(bf16), vh,
                                 preferred_element_type=f32))             # (S, dv)

    ctx = jnp.concatenate(ctx_heads, axis=-1)                             # (S, Dv)
    attn = jnp.dot(ctx.astype(bf16), wo_ref[...],
                   preferred_element_type=f32)                            # (S, H)
    x = x + attn                                                          # residual

    # ------------- pre-LN + Conv1d(k=3, pad='both')+ReLU (twice) + residual ---------
    x2 = layer_norm(x, ln[2:3], ln[3:4])

    # Hoisted boundary masks (computed once, reused by both convs).
    row = lax.broadcasted_iota(jnp.int32, (seq, 1), 0)
    not_first = row != 0
    not_last = row != seq - 1

    b1 = bias_ref[:, :F]                         # (1, F)
    b2 = bias_ref[:, F:]                         # (1, H)

    def conv3_relu(z, w_ref, b):
        # z: (S, Cin) f32; w_ref: (3*Cin, Cout) bf16; b: (1, Cout) f32
        z_prev = jnp.where(not_first, pltpu.roll(z, 1, 0), f32(0))        # z[t-1]
        z_next = jnp.where(not_last, pltpu.roll(z, seq - 1, 0), f32(0))   # z[t+1]
        z_cat = jnp.concatenate([z_prev, z, z_next], axis=-1)             # (S, 3*Cin)
        y = jnp.dot(z_cat.astype(bf16), w_ref[...],
                    preferred_element_type=f32) + b
        return jnp.maximum(y, f32(0))

    h1 = conv3_relu(x2, c1w_ref, b1)             # ReLU after BOTH convs (PyTorch loop)
    ffn = conv3_relu(h1, c2w_ref, b2)

    o_ref[0] = (x + ffn).astype(o_ref.dtype)


# --------------------------------------------------------------------------------------
# One-time parameter preparation (hoisted out of the forward pass)
# --------------------------------------------------------------------------------------
def prepare_params(params):
    nh = params["num_heads"]
    H = params["ln_mha_g"].shape[0]
    Dk, Dv = params["wq"].shape[0], params["wv"].shape[0]
    F = params["conv1_w"].shape[0]
    dk = Dk // nh
    scale = float(dk) ** -0.5
    f32, bf16 = jnp.float32, jnp.bfloat16

    # nn.Linear weight is (out, in); fused QKV as (H, 2*Dk+Dv) with Q-scale folded in.
    wqkv = jnp.concatenate([params["wq"].T * scale,
                            params["wk"].T,
                            params["wv"].T], axis=1).astype(bf16)          # (H, 2Dk+Dv)
    wo = params["wo"].T.astype(bf16)                                       # (Dv, H)

    # Conv1d weight (Cout, Cin, 3) -> stacked taps (3*Cin, Cout) so conv == 1 matmul
    # against [z[t-1] | z[t] | z[t+1]].
    def conv_taps(w):
        return jnp.concatenate([w[:, :, 0].T, w[:, :, 1].T, w[:, :, 2].T], axis=0)

    c1 = conv_taps(params["conv1_w"]).astype(bf16)                         # (3H, F)
    c2 = conv_taps(params["conv2_w"]).astype(bf16)                         # (3F, H)

    ln_pack = jnp.stack([params["ln_mha_g"], params["ln_mha_b"],
                         params["ln_ffn_g"], params["ln_ffn_b"]],
                        axis=0).astype(f32)                                # (4, H)
    bias_pack = jnp.concatenate([params["conv1_b"],
                                 params["conv2_b"]])[None, :].astype(f32)  # (1, F+H)

    return dict(num_heads=nh, hidden=H, filter=F,
                total_key_depth=Dk, total_value_depth=Dv,
                ln_pack=ln_pack, wqkv=wqkv, wo=wo,
                conv1_w=c1, conv2_w=c2, bias_pack=bias_pack)


# --------------------------------------------------------------------------------------
# EncoderLayer.forward (single fused pallas_call)
# --------------------------------------------------------------------------------------
def encoder_layer_forward(prep, all_inputs):
    inputs, current_turn, last_turn_mask, mask = all_inputs
    B, S, H = inputs.shape
    nh, Dk, Dv, F = (prep["num_heads"], prep["total_key_depth"],
                     prep["total_value_depth"], prep["filter"])

    kernel = functools.partial(encoder_layer_kernel,
                               num_heads=nh, total_key_depth=Dk,
                               total_value_depth=Dv, filter_size=F, eps=1e-6)
    const2 = lambda b: (0, 0)

    y = pl.pallas_call(
        kernel,
        out_shape=jax.ShapeDtypeStruct((B, S, H), inputs.dtype),
        grid=(B,),
        in_specs=[
            pl.BlockSpec((1, S, H), lambda b: (b, 0, 0)),     # x
            pl.BlockSpec((1, 1, S), lambda b: (b, 0, 0)),     # pad mask (1.0 == masked)
            pl.BlockSpec((4, H), const2),                     # LN gamma/beta pack
            pl.BlockSpec((H, 2 * Dk + Dv), const2),           # fused Wqkv (bf16, Q scaled)
            pl.BlockSpec((Dv, H), const2),                    # Wo (bf16)
            pl.BlockSpec((3 * H, F), const2),                 # conv1 taps (bf16)
            pl.BlockSpec((3 * F, H), const2),                 # conv2 taps (bf16)
            pl.BlockSpec((1, F + H), const2),                 # conv biases pack
        ],
        out_specs=pl.BlockSpec((1, S, H), lambda b: (b, 0, 0)),
        compiler_params=pltpu.CompilerParams(
            dimension_semantics=("parallel",),
        ),
    )(inputs, mask,
      prep["ln_pack"], prep["wqkv"], prep["wo"],
      prep["conv1_w"], prep["conv2_w"], prep["bias_pack"])

    return (inputs, y, last_turn_mask, mask)


# --------------------------------------------------------------------------------------
# Pure-JAX f32 reference (numerical sanity check against the PyTorch semantics)
# --------------------------------------------------------------------------------------
def reference_forward(params, all_inputs):
    inputs, _, _, mask = all_inputs

    def ln(x, g, b, eps=1e-6):
        mean = x.mean(-1, keepdims=True)
        std = jnp.sqrt(((x - mean) ** 2).sum(-1, keepdims=True) / (x.shape[-1] - 1))
        return g * (x - mean) / (std + eps) + b

    nh = params["num_heads"]
    B, S, H = inputs.shape
    Dk, Dv = params["wq"].shape[0], params["wv"].shape[0]
    dk, dv = Dk // nh, Dv // nh

    x = inputs
    x_norm = ln(x, params["ln_mha_g"], params["ln_mha_b"])
    q = x_norm @ params["wq"].T
    k = x_norm @ params["wk"].T
    v = x_norm @ params["wv"].T
    split = lambda t, d: t.reshape(B, S, nh, d).transpose(0, 2, 1, 3)
    q, k, v = split(q, dk) * dk ** -0.5, split(k, dk), split(v, dv)
    logits = jnp.einsum("bhqd,bhkd->bhqk", q, k)
    logits = jnp.where(mask[:, None, :, :] > 0.5, -1e18, logits)
    w = jax.nn.softmax(logits, axis=-1)
    ctx = jnp.einsum("bhqk,bhkd->bhqd", w, v).transpose(0, 2, 1, 3).reshape(B, S, Dv)
    x = x + ctx @ params["wo"].T

    x2 = ln(x, params["ln_ffn_g"], params["ln_ffn_b"])

    def conv(xin, wc, bc):
        xp = jnp.pad(xin, ((0, 0), (1, 1), (0, 0)))
        return (xp[:, :-2] @ wc[:, :, 0].T + xp[:, 1:-1] @ wc[:, :, 1].T
                + xp[:, 2:] @ wc[:, :, 2].T) + bc

    h = jax.nn.relu(conv(x2, params["conv1_w"], params["conv1_b"]))
    ffn = jax.nn.relu(conv(h, params["conv2_w"], params["conv2_b"]))
    return x + ffn


if __name__ == "__main__":
    B, S, H = 2, 8, 32
    num_heads = 4
    total_key_depth = 32
    total_value_depth = 32
    filter_size = 64

    key = jax.random.PRNGKey(0)
    ks = jax.random.split(key, 10)
    params = dict(
        num_heads=num_heads,
        ln_mha_g=jnp.ones((H,), jnp.float32),
        ln_mha_b=jnp.zeros((H,), jnp.float32),
        ln_ffn_g=jnp.ones((H,), jnp.float32),
        ln_ffn_b=jnp.zeros((H,), jnp.float32),
        wq=0.1 * jax.random.normal(ks[0], (total_key_depth, H), jnp.float32),
        wk=0.1 * jax.random.normal(ks[1], (total_key_depth, H), jnp.float32),
        wv=0.1 * jax.random.normal(ks[2], (total_value_depth, H), jnp.float32),
        wo=0.1 * jax.random.normal(ks[3], (H, total_value_depth), jnp.float32),
        conv1_w=0.1 * jax.random.normal(ks[4], (filter_size, H, 3), jnp.float32),
        conv1_b=0.01 * jax.random.normal(ks[5], (filter_size,), jnp.float32),
        conv2_w=0.1 * jax.random.normal(ks[6], (H, filter_size, 3), jnp.float32),
        conv2_b=0.01 * jax.random.normal(ks[7], (H,), jnp.float32),
    )
    prep = prepare_params(params)   # one-time weight re-layout / packing / bf16 cast

    inputs = jax.random.normal(ks[8], (B, S, H), jnp.float32)
    current_turn = jax.random.normal(ks[9], (B, S, H), jnp.float32)   # unused by forward
    last_turn_mask = jnp.zeros((B, 1, S), jnp.float32)                # passed through
    # boolean pad mask (1.0 == masked); mask out last 2 positions of batch 1
    mask = jnp.zeros((B, 1, S), jnp.float32).at[1, 0, S - 2:].set(1.0)

    all_inputs = (inputs, current_turn, last_turn_mask, mask)
    out = encoder_layer_forward(prep, all_inputs)
    out = jax.block_until_ready(out)

    y = out[1]
    y_ref = reference_forward(params, all_inputs)
    max_err = float(jnp.max(jnp.abs(y - y_ref)))
    assert jnp.allclose(y, y_ref, atol=5e-2, rtol=5e-2), f"max abs err {max_err}"
    print("KERNEL_OK")
</pallas_src>

<mosaic_0001>
module attributes {stable_mosaic.version = 11 : i64} {
  func.func @encoder_layer_kernel(%arg0: i32, %arg1: memref<1x8x32xf32, #tpu.memory_space<vmem>>, %arg2: memref<1x1x8xf32, #tpu.memory_space<vmem>>, %arg3: memref<4x32xf32, #tpu.memory_space<vmem>>, %arg4: memref<32x96xbf16, #tpu.memory_space<vmem>>, %arg5: memref<32x32xbf16, #tpu.memory_space<vmem>>, %arg6: memref<96x64xbf16, #tpu.memory_space<vmem>>, %arg7: memref<192x32xbf16, #tpu.memory_space<vmem>>, %arg8: memref<1x96xf32, #tpu.memory_space<vmem>>, %arg9: memref<1x8x32xf32, #tpu.memory_space<vmem>>) attributes {dimension_semantics = [#tpu.dimension_semantics<parallel>], iteration_bounds = array<i64: 2>, scalar_prefetch = 0 : i64, scratch_operands = 0 : i64, tpu.core_type = #tpu.core_type<tc>, window_params = [{transform_indices = @transform_0, window_bounds = array<i64: 1, 8, 32>}, {transform_indices = @transform_1, window_bounds = array<i64: 1, 1, 8>}, {pipeline_mode = #tpu.pipeline_mode<synchronous>, transform_indices = @transform_2, window_bounds = array<i64: 4, 32>}, {pipeline_mode = #tpu.pipeline_mode<synchronous>, transform_indices = @transform_3, window_bounds = array<i64: 32, 96>}, {pipeline_mode = #tpu.pipeline_mode<synchronous>, transform_indices = @transform_4, window_bounds = array<i64: 32, 32>}, {pipeline_mode = #tpu.pipeline_mode<synchronous>, transform_indices = @transform_5, window_bounds = array<i64: 96, 64>}, {pipeline_mode = #tpu.pipeline_mode<synchronous>, transform_indices = @transform_6, window_bounds = array<i64: 192, 32>}, {pipeline_mode = #tpu.pipeline_mode<synchronous>, transform_indices = @transform_7, window_bounds = array<i64: 1, 96>}, {transform_indices = @transform_8, window_bounds = array<i64: 1, 8, 32>}]} {
    %c0 = arith.constant 0 : index
    %c0_0 = arith.constant 0 : index
    %c0_1 = arith.constant 0 : index
    %0 = vector.load %arg1[%c0, %c0_0, %c0_1] : memref<1x8x32xf32, #tpu.memory_space<vmem>>, vector<1x8x32xf32>
    %1 = vector.shape_cast %0 : vector<1x8x32xf32> to vector<8x32xf32>
    %c0_2 = arith.constant 0 : index
    %c0_3 = arith.constant 0 : index
    %2 = vector.load %arg3[%c0_2, %c0_3] : memref<4x32xf32, #tpu.memory_space<vmem>>, vector<4x32xf32>
    %3 = vector.extract_strided_slice %2 {offsets = [0, 0], sizes = [1, 32], strides = [1, 1]} : vector<4x32xf32> to vector<1x32xf32>
    %4 = vector.extract_strided_slice %2 {offsets = [1, 0], sizes = [1, 32], strides = [1, 1]} : vector<4x32xf32> to vector<1x32xf32>
    %cst = arith.constant dense<0.000000e+00> : vector<8xf32>
    %5 = vector.multi_reduction <add>, %1, %cst [1] : vector<8x32xf32> to vector<8xf32>
    %6 = vector.shape_cast %5 : vector<8xf32> to vector<8x1xf32>
    %cst_4 = arith.constant 3.200000e+01 : f32
    %7 = vector.broadcast %cst_4 : f32 to vector<8x1xf32>
    %8 = arith.divf %6, %7 : vector<8x1xf32>
    %9 = vector.broadcast %8 : vector<8x1xf32> to vector<8x32xf32>
    %10 = arith.subf %1, %9 : vector<8x32xf32>
    %11 = arith.mulf %10, %10 : vector<8x32xf32>
    %cst_5 = arith.constant dense<0.000000e+00> : vector<8xf32>
    %12 = vector.multi_reduction <add>, %11, %cst_5 [1] : vector<8x32xf32> to vector<8xf32>
    %13 = vector.shape_cast %12 : vector<8xf32> to vector<8x1xf32>
    %cst_6 = arith.constant 0.0322580636 : f32
    %14 = vector.broadcast %cst_6 : f32 to vector<8x1xf32>
    %15 = arith.mulf %13, %14 : vector<8x1xf32>
    %16 = math.sqrt %15 : vector<8x1xf32>
    %cst_7 = arith.constant 9.99999997E-7 : f32
    %17 = vector.broadcast %cst_7 : f32 to vector<8x1xf32>
    %18 = arith.addf %16, %17 : vector<8x1xf32>
    %cst_8 = arith.constant 1.000000e+00 : f32
    %19 = vector.broadcast %cst_8 : f32 to vector<8x1xf32>
    %20 = arith.divf %19, %18 : vector<8x1xf32>
    %21 = vector.broadcast %8 : vector<8x1xf32> to vector<8x32xf32>
    %22 = arith.subf %1, %21 : vector<8x32xf32>
    %23 = vector.broadcast %20 : vector<8x1xf32> to vector<8x32xf32>
    %24 = arith.mulf %22, %23 : vector<8x32xf32>
    %25 = vector.broadcast %3 : vector<1x32xf32> to vector<8x32xf32>
    %26 = arith.mulf %24, %25 : vector<8x32xf32>
    %27 = vector.broadcast %4 : vector<1x32xf32> to vector<8x32xf32>
    %28 = arith.addf %26, %27 : vector<8x32xf32>
    %29 = arith.truncf %28 : vector<8x32xf32> to vector<8x32xbf16>
    %c0_9 = arith.constant 0 : index
    %c0_10 = arith.constant 0 : index
    %30 = vector.load %arg4[%c0_9, %c0_10] : memref<32x96xbf16, #tpu.memory_space<vmem>>, vector<32x96xbf16>
    %cst_11 = arith.constant dense<0.000000e+00> : vector<8x96xf32>
    %31 = tpu.matmul %29, %30, %cst_11 {dimension_numbers = #tpu.dot_dimension_numbers<[1], [0], [0], [1], [0, 0, 1, 1], [], []>} : vector<8x32xbf16>, vector<32x96xbf16>, vector<8x96xf32> -> vector<8x96xf32>
    %c0_12 = arith.constant 0 : index
    %c0_13 = arith.constant 0 : index
    %c0_14 = arith.constant 0 : index
    %32 = vector.load %arg2[%c0_12, %c0_13, %c0_14] : memref<1x1x8xf32, #tpu.memory_space<vmem>>, vector<1x1x8xf32>
    %33 = vector.shape_cast %32 : vector<1x1x8xf32> to vector<1x8xf32>
    %cst_15 = arith.constant -9.99999984E+17 : f32
    %34 = vector.broadcast %cst_15 : f32 to vector<1x8xf32>
    %35 = arith.mulf %33, %34 : vector<1x8xf32>
    %36 = vector.extract_strided_slice %31 {offsets = [0, 0], sizes = [8, 8], strides = [1, 1]} : vector<8x96xf32> to vector<8x8xf32>
    %37 = arith.truncf %36 : vector<8x8xf32> to vector<8x8xbf16>
    %38 = vector.extract_strided_slice %31 {offsets = [0, 32], sizes = [8, 8], strides = [1, 1]} : vector<8x96xf32> to vector<8x8xf32>
    %39 = arith.truncf %38 : vector<8x8xf32> to vector<8x8xbf16>
    %40 = vector.extract_strided_slice %31 {offsets = [0, 64], sizes = [8, 8], strides = [1, 1]} : vector<8x96xf32> to vector<8x8xf32>
    %41 = arith.truncf %40 : vector<8x8xf32> to vector<8x8xbf16>
    %cst_16 = arith.constant dense<0.000000e+00> : vector<8x8xf32>
    %42 = tpu.matmul %37, %39, %cst_16 {dimension_numbers = #tpu.dot_dimension_numbers<[1], [1], [0], [0], [0, 0, 1, 0], [], []>} : vector<8x8xbf16>, vector<8x8xbf16>, vector<8x8xf32> -> vector<8x8xf32>
    %43 = vector.broadcast %35 : vector<1x8xf32> to vector<8x8xf32>
    %44 = arith.addf %42, %43 : vector<8x8xf32>
    %cst_17 = arith.constant dense<0xFF800000> : vector<8xf32>
    %45 = vector.multi_reduction <maximumf>, %44, %cst_17 [1] : vector<8x8xf32> to vector<8xf32>
    %46 = vector.shape_cast %45 : vector<8xf32> to vector<8x1xf32>
    %47 = vector.broadcast %46 : vector<8x1xf32> to vector<8x8xf32>
    %48 = arith.subf %44, %47 : vector<8x8xf32>
    %49 = math.exp %48 : vector<8x8xf32>
    %cst_18 = arith.constant dense<0.000000e+00> : vector<8xf32>
    %50 = vector.multi_reduction <add>, %49, %cst_18 [1] : vector<8x8xf32> to vector<8xf32>
    %51 = vector.shape_cast %50 : vector<8xf32> to vector<8x1xf32>
    %52 = tpu.reciprocal %51 {approx = true} : vector<8x1xf32> -> vector<8x1xf32>
    %53 = vector.broadcast %52 : vector<8x1xf32> to vector<8x8xf32>
    %54 = arith.mulf %49, %53 : vector<8x8xf32>
    %55 = arith.truncf %54 : vector<8x8xf32> to vector<8x8xbf16>
    %cst_19 = arith.constant dense<0.000000e+00> : vector<8x8xf32>
    %56 = tpu.matmul %55, %41, %cst_19 {dimension_numbers = #tpu.dot_dimension_numbers<[1], [0], [0], [1], [0, 0, 1, 1], [], []>} : vector<8x8xbf16>, vector<8x8xbf16>, vector<8x8xf32> -> vector<8x8xf32>
    %57 = vector.extract_strided_slice %31 {offsets = [0, 8], sizes = [8, 8], strides = [1, 1]} : vector<8x96xf32> to vector<8x8xf32>
    %58 = arith.truncf %57 : vector<8x8xf32> to vector<8x8xbf16>
    %59 = vector.extract_strided_slice %31 {offsets = [0, 40], sizes = [8, 8], strides = [1, 1]} : vector<8x96xf32> to vector<8x8xf32>
    %60 = arith.truncf %59 : vector<8x8xf32> to vector<8x8xbf16>
    %61 = vector.extract_strided_slice %31 {offsets = [0, 72], sizes = [8, 8], strides = [1, 1]} : vector<8x96xf32> to vector<8x8xf32>
    %62 = arith.truncf %61 : vector<8x8xf32> to vector<8x8xbf16>
    %cst_20 = arith.constant dense<0.000000e+00> : vector<8x8xf32>
    %63 = tpu.matmul %58, %60, %cst_20 {dimension_numbers = #tpu.dot_dimension_numbers<[1], [1], [0], [0], [0, 0, 1, 0], [], []>} : vector<8x8xbf16>, vector<8x8xbf16>, vector<8x8xf32> -> vector<8x8xf32>
    %64 = vector.broadcast %35 : vector<1x8xf32> to vector<8x8xf32>
    %65 = arith.addf %63, %64 : vector<8x8xf32>
    %cst_21 = arith.constant dense<0xFF800000> : vector<8xf32>
    %66 = vector.multi_reduction <maximumf>, %65, %cst_21 [1] : vector<8x8xf32> to vector<8xf32>
    %67 = vector.shape_cast %66 : vector<8xf32> to vector<8x1xf32>
    %68 = vector.broadcast %67 : vector<8x1xf32> to vector<8x8xf32>
    %69 = arith.subf %65, %68 : vector<8x8xf32>
    %70 = math.exp %69 : vector<8x8xf32>
    %cst_22 = arith.constant dense<0.000000e+00> : vector<8xf32>
    %71 = vector.multi_reduction <add>, %70, %cst_22 [1] : vector<8x8xf32> to vector<8xf32>
    %72 = vector.shape_cast %71 : vector<8xf32> to vector<8x1xf32>
    %73 = tpu.reciprocal %72 {approx = true} : vector<8x1xf32> -> vector<8x1xf32>
    %74 = vector.broadcast %73 : vector<8x1xf32> to vector<8x8xf32>
    %75 = arith.mulf %70, %74 : vector<8x8xf32>
    %76 = arith.truncf %75 : vector<8x8xf32> to vector<8x8xbf16>
    %cst_23 = arith.constant dense<0.000000e+00> : vector<8x8xf32>
    %77 = tpu.matmul %76, %62, %cst_23 {dimension_numbers = #tpu.dot_dimension_numbers<[1], [0], [0], [1], [0, 0, 1, 1], [], []>} : vector<8x8xbf16>, vector<8x8xbf16>, vector<8x8xf32> -> vector<8x8xf32>
    %78 = vector.extract_strided_slice %31 {offsets = [0, 16], sizes = [8, 8], strides = [1, 1]} : vector<8x96xf32> to vector<8x8xf32>
    %79 = arith.truncf %78 : vector<8x8xf32> to vector<8x8xbf16>
    %80 = vector.extract_strided_slice %31 {offsets = [0, 48], sizes = [8, 8], strides = [1, 1]} : vector<8x96xf32> to vector<8x8xf32>
    %81 = arith.truncf %80 : vector<8x8xf32> to vector<8x8xbf16>
    %82 = vector.extract_strided_slice %31 {offsets = [0, 80], sizes = [8, 8], strides = [1, 1]} : vector<8x96xf32> to vector<8x8xf32>
    %83 = arith.truncf %82 : vector<8x8xf32> to vector<8x8xbf16>
    %cst_24 = arith.constant dense<0.000000e+00> : vector<8x8xf32>
    %84 = tpu.matmul %79, %81, %cst_24 {dimension_numbers = #tpu.dot_dimension_numbers<[1], [1], [0], [0], [0, 0, 1, 0], [], []>} : vector<8x8xbf16>, vector<8x8xbf16>, vector<8x8xf32> -> vector<8x8xf32>
    %85 = vector.broadcast %35 : vector<1x8xf32> to vector<8x8xf32>
    %86 = arith.addf %84, %85 : vector<8x8xf32>
    %cst_25 = arith.constant dense<0xFF800000> : vector<8xf32>
    %87 = vector.multi_reduction <maximumf>, %86, %cst_25 [1] : vector<8x8xf32> to vector<8xf32>
    %88 = vector.shape_cast %87 : vector<8xf32> to vector<8x1xf32>
    %89 = vector.broadcast %88 : vector<8x1xf32> to vector<8x8xf32>
    %90 = arith.subf %86, %89 : vector<8x8xf32>
    %91 = math.exp %90 : vector<8x8xf32>
    %cst_26 = arith.constant dense<0.000000e+00> : vector<8xf32>
    %92 = vector.multi_reduction <add>, %91, %cst_26 [1] : vector<8x8xf32> to vector<8xf32>
    %93 = vector.shape_cast %92 : vector<8xf32> to vector<8x1xf32>
    %94 = tpu.reciprocal %93 {approx = true} : vector<8x1xf32> -> vector<8x1xf32>
    %95 = vector.broadcast %94 : vector<8x1xf32> to vector<8x8xf32>
    %96 = arith.mulf %91, %95 : vector<8x8xf32>
    %97 = arith.truncf %96 : vector<8x8xf32> to vector<8x8xbf16>
    %cst_27 = arith.constant dense<0.000000e+00> : vector<8x8xf32>
    %98 = tpu.matmul %97, %83, %cst_27 {dimension_numbers = #tpu.dot_dimension_numbers<[1], [0], [0], [1], [0, 0, 1, 1], [], []>} : vector<8x8xbf16>, vector<8x8xbf16>, vector<8x8xf32> -> vector<8x8xf32>
    %99 = vector.extract_strided_slice %31 {offsets = [0, 24], sizes = [8, 8], strides = [1, 1]} : vector<8x96xf32> to vector<8x8xf32>
    %100 = arith.truncf %99 : vector<8x8xf32> to vector<8x8xbf16>
    %101 = vector.extract_strided_slice %31 {offsets = [0, 56], sizes = [8, 8], strides = [1, 1]} : vector<8x96xf32> to vector<8x8xf32>
    %102 = arith.truncf %101 : vector<8x8xf32> to vector<8x8xbf16>
    %103 = vector.extract_strided_slice %31 {offsets = [0, 88], sizes = [8, 8], strides = [1, 1]} : vector<8x96xf32> to vector<8x8xf32>
    %104 = arith.truncf %103 : vector<8x8xf32> to vector<8x8xbf16>
    %cst_28 = arith.constant dense<0.000000e+00> : vector<8x8xf32>
    %105 = tpu.matmul %100, %102, %cst_28 {dimension_numbers = #tpu.dot_dimension_numbers<[1], [1], [0], [0], [0, 0, 1, 0], [], []>} : vector<8x8xbf16>, vector<8x8xbf16>, vector<8x8xf32> -> vector<8x8xf32>
    %106 = vector.broadcast %35 : vector<1x8xf32> to vector<8x8xf32>
    %107 = arith.addf %105, %106 : vector<8x8xf32>
    %cst_29 = arith.constant dense<0xFF800000> : vector<8xf32>
    %108 = vector.multi_reduction <maximumf>, %107, %cst_29 [1] : vector<8x8xf32> to vector<8xf32>
    %109 = vector.shape_cast %108 : vector<8xf32> to vector<8x1xf32>
    %110 = vector.broadcast %109 : vector<8x1xf32> to vector<8x8xf32>
    %111 = arith.subf %107, %110 : vector<8x8xf32>
    %112 = math.exp %111 : vector<8x8xf32>
    %cst_30 = arith.constant dense<0.000000e+00> : vector<8xf32>
    %113 = vector.multi_reduction <add>, %112, %cst_30 [1] : vector<8x8xf32> to vector<8xf32>
    %114 = vector.shape_cast %113 : vector<8xf32> to vector<8x1xf32>
    %115 = tpu.reciprocal %114 {approx = true} : vector<8x1xf32> -> vector<8x1xf32>
    %116 = vector.broadcast %115 : vector<8x1xf32> to vector<8x8xf32>
    %117 = arith.mulf %112, %116 : vector<8x8xf32>
    %118 = arith.truncf %117 : vector<8x8xf32> to vector<8x8xbf16>
    %cst_31 = arith.constant dense<0.000000e+00> : vector<8x8xf32>
    %119 = tpu.matmul %118, %104, %cst_31 {dimension_numbers = #tpu.dot_dimension_numbers<[1], [0], [0], [1], [0, 0, 1, 1], [], []>} : vector<8x8xbf16>, vector<8x8xbf16>, vector<8x8xf32> -> vector<8x8xf32>
    %120 = tpu.concatenate %56, %77, %98, %119 in 1 : vector<8x8xf32>, vector<8x8xf32>, vector<8x8xf32>, vector<8x8xf32> -> vector<8x32xf32>
    %121 = arith.truncf %120 : vector<8x32xf32> to vector<8x32xbf16>
    %c0_32 = arith.constant 0 : index
    %c0_33 = arith.constant 0 : index
    %122 = vector.load %arg5[%c0_32, %c0_33] : memref<32x32xbf16, #tpu.memory_space<vmem>>, vector<32x32xbf16>
    %cst_34 = arith.constant dense<0.000000e+00> : vector<8x32xf32>
    %123 = tpu.matmul %121, %122, %cst_34 {dimension_numbers = #tpu.dot_dimension_numbers<[1], [0], [0], [1], [0, 0, 1, 1], [], []>} : vector<8x32xbf16>, vector<32x32xbf16>, vector<8x32xf32> -> vector<8x32xf32>
    %124 = arith.addf %1, %123 : vector<8x32xf32>
    %125 = vector.extract_strided_slice %2 {offsets = [2, 0], sizes = [1, 32], strides = [1, 1]} : vector<4x32xf32> to vector<1x32xf32>
    %126 = vector.extract_strided_slice %2 {offsets = [3, 0], sizes = [1, 32], strides = [1, 1]} : vector<4x32xf32> to vector<1x32xf32>
    %cst_35 = arith.constant dense<0.000000e+00> : vector<8xf32>
    %127 = vector.multi_reduction <add>, %124, %cst_35 [1] : vector<8x32xf32> to vector<8xf32>
    %128 = vector.shape_cast %127 : vector<8xf32> to vector<8x1xf32>
    %cst_36 = arith.constant 3.200000e+01 : f32
    %129 = vector.broadcast %cst_36 : f32 to vector<8x1xf32>
    %130 = arith.divf %128, %129 : vector<8x1xf32>
    %131 = vector.broadcast %130 : vector<8x1xf32> to vector<8x32xf32>
    %132 = arith.subf %124, %131 : vector<8x32xf32>
    %133 = arith.mulf %132, %132 : vector<8x32xf32>
    %cst_37 = arith.constant dense<0.000000e+00> : vector<8xf32>
    %134 = vector.multi_reduction <add>, %133, %cst_37 [1] : vector<8x32xf32> to vector<8xf32>
    %135 = vector.shape_cast %134 : vector<8xf32> to vector<8x1xf32>
    %cst_38 = arith.constant 0.0322580636 : f32
    %136 = vector.broadcast %cst_38 : f32 to vector<8x1xf32>
    %137 = arith.mulf %135, %136 : vector<8x1xf32>
    %138 = math.sqrt %137 : vector<8x1xf32>
    %cst_39 = arith.constant 9.99999997E-7 : f32
    %139 = vector.broadcast %cst_39 : f32 to vector<8x1xf32>
    %140 = arith.addf %138, %139 : vector<8x1xf32>
    %cst_40 = arith.constant 1.000000e+00 : f32
    %141 = vector.broadcast %cst_40 : f32 to vector<8x1xf32>
    %142 = arith.divf %141, %140 : vector<8x1xf32>
    %143 = vector.broadcast %130 : vector<8x1xf32> to vector<8x32xf32>
    %144 = arith.subf %124, %143 : vector<8x32xf32>
    %145 = vector.broadcast %142 : vector<8x1xf32> to vector<8x32xf32>
    %146 = arith.mulf %144, %145 : vector<8x32xf32>
    %147 = vector.broadcast %125 : vector<1x32xf32> to vector<8x32xf32>
    %148 = arith.mulf %146, %147 : vector<8x32xf32>
    %149 = vector.broadcast %126 : vector<1x32xf32> to vector<8x32xf32>
    %150 = arith.addf %148, %149 : vector<8x32xf32>
    %151 = tpu.iota {dimensions = array<i32: 0>} : vector<8x1xi32>
    %c0_i32 = arith.constant 0 : i32
    %152 = vector.broadcast %c0_i32 : i32 to vector<8x1xi32>
    %153 = arith.cmpi ne, %151, %152 : vector<8x1xi32>
    %c7_i32 = arith.constant 7 : i32
    %154 = vector.broadcast %c7_i32 : i32 to vector<8x1xi32>
    %155 = arith.cmpi ne, %151, %154 : vector<8x1xi32>
    %c0_41 = arith.constant 0 : index
    %c0_42 = arith.constant 0 : index
    %156 = vector.load %arg8[%c0_41, %c0_42] : memref<1x96xf32, #tpu.memory_space<vmem>>, vector<1x64xf32>
    %c0_43 = arith.constant 0 : index
    %c64 = arith.constant 64 : index
    %157 = vector.load %arg8[%c0_43, %c64] : memref<1x96xf32, #tpu.memory_space<vmem>>, vector<1x32xf32>
    %c1_i32 = arith.constant 1 : i32
    %158 = tpu.dynamic_rotate %150 by %c1_i32 dim 0 : vector<8x32xf32>, i32 -> vector<8x32xf32>
    %cst_44 = arith.constant 0.000000e+00 : f32
    %159 = vector.shape_cast %153 : vector<8x1xi1> to vector<8x1xi1>
    %160 = vector.broadcast %159 : vector<8x1xi1> to vector<8x32xi1>
    %161 = vector.broadcast %cst_44 : f32 to vector<8x32xf32>
    %162 = arith.select %160, %158, %161 : vector<8x32xi1>, vector<8x32xf32>
    %c7_i32_45 = arith.constant 7 : i32
    %163 = tpu.dynamic_rotate %150 by %c7_i32_45 dim 0 : vector<8x32xf32>, i32 -> vector<8x32xf32>
    %cst_46 = arith.constant 0.000000e+00 : f32
    %164 = vector.shape_cast %155 : vector<8x1xi1> to vector<8x1xi1>
    %165 = vector.broadcast %164 : vector<8x1xi1> to vector<8x32xi1>
    %166 = vector.broadcast %cst_46 : f32 to vector<8x32xf32>
    %167 = arith.select %165, %163, %166 : vector<8x32xi1>, vector<8x32xf32>
    %168 = tpu.concatenate %162, %150, %167 in 1 : vector<8x32xf32>, vector<8x32xf32>, vector<8x32xf32> -> vector<8x96xf32>
    %169 = arith.truncf %168 : vector<8x96xf32> to vector<8x96xbf16>
    %c0_47 = arith.constant 0 : index
    %c0_48 = arith.constant 0 : index
    %170 = vector.load %arg6[%c0_47, %c0_48] : memref<96x64xbf16, #tpu.memory_space<vmem>>, vector<96x64xbf16>
    %cst_49 = arith.constant dense<0.000000e+00> : vector<8x64xf32>
    %171 = tpu.matmul %169, %170, %cst_49 {dimension_numbers = #tpu.dot_dimension_numbers<[1], [0], [0], [1], [0, 0, 1, 1], [], []>} : vector<8x96xbf16>, vector<96x64xbf16>, vector<8x64xf32> -> vector<8x64xf32>
    %172 = vector.broadcast %156 : vector<1x64xf32> to vector<8x64xf32>
    %173 = arith.addf %171, %172 : vector<8x64xf32>
    %cst_50 = arith.constant 0.000000e+00 : f32
    %174 = vector.broadcast %cst_50 : f32 to vector<8x64xf32>
    %175 = arith.maximumf %173, %174 : vector<8x64xf32>
    %c1_i32_51 = arith.constant 1 : i32
    %176 = tpu.dynamic_rotate %175 by %c1_i32_51 dim 0 : vector<8x64xf32>, i32 -> vector<8x64xf32>
    %cst_52 = arith.constant 0.000000e+00 : f32
    %177 = vector.shape_cast %153 : vector<8x1xi1> to vector<8x1xi1>
    %178 = vector.broadcast %177 : vector<8x1xi1> to vector<8x64xi1>
    %179 = vector.broadcast %cst_52 : f32 to vector<8x64xf32>
    %180 = arith.select %178, %176, %179 : vector<8x64xi1>, vector<8x64xf32>
    %c7_i32_53 = arith.constant 7 : i32
    %181 = tpu.dynamic_rotate %175 by %c7_i32_53 dim 0 : vector<8x64xf32>, i32 -> vector<8x64xf32>
    %cst_54 = arith.constant 0.000000e+00 : f32
    %182 = vector.shape_cast %155 : vector<8x1xi1> to vector<8x1xi1>
    %183 = vector.broadcast %182 : vector<8x1xi1> to vector<8x64xi1>
    %184 = vector.broadcast %cst_54 : f32 to vector<8x64xf32>
    %185 = arith.select %183, %181, %184 : vector<8x64xi1>, vector<8x64xf32>
    %186 = tpu.concatenate %180, %175, %185 in 1 : vector<8x64xf32>, vector<8x64xf32>, vector<8x64xf32> -> vector<8x192xf32>
    %187 = arith.truncf %186 : vector<8x192xf32> to vector<8x192xbf16>
    %c0_55 = arith.constant 0 : index
    %c0_56 = arith.constant 0 : index
    %188 = vector.load %arg7[%c0_55, %c0_56] : memref<192x32xbf16, #tpu.memory_space<vmem>>, vector<192x32xbf16>
    %cst_57 = arith.constant dense<0.000000e+00> : vector<8x32xf32>
    %189 = tpu.matmul %187, %188, %cst_57 {dimension_numbers = #tpu.dot_dimension_numbers<[1], [0], [0], [1], [0, 0, 1, 1], [], []>} : vector<8x192xbf16>, vector<192x32xbf16>, vector<8x32xf32> -> vector<8x32xf32>
    %190 = vector.broadcast %157 : vector<1x32xf32> to vector<8x32xf32>
    %191 = arith.addf %189, %190 : vector<8x32xf32>
    %cst_58 = arith.constant 0.000000e+00 : f32
    %192 = vector.broadcast %cst_58 : f32 to vector<8x32xf32>
    %193 = arith.maximumf %191, %192 : vector<8x32xf32>
    %194 = arith.addf %124, %193 : vector<8x32xf32>
    %c0_59 = arith.constant 0 : index
    %c0_60 = arith.constant 0 : index
    %c0_61 = arith.constant 0 : index
    %195 = vector.load %arg9[%c0_59, %c0_60, %c0_61] : memref<1x8x32xf32, #tpu.memory_space<vmem>>, vector<1x8x32xf32>
    %196 = vector.shape_cast %195 : vector<1x8x32xf32> to vector<8x32xf32>
    %197 = vector.shape_cast %194 : vector<8x32xf32> to vector<1x8x32xf32>
    tpu.vector_store %arg9[%c0_59, %c0_60, %c0_61], %197 {strides = array<i32>} : memref<1x8x32xf32, #tpu.memory_space<vmem>>, vector<1x8x32xf32>,
    return
  }
  func.func @transform_0(%arg0: i32) -> (i32, i32, i32) {
    %c0_i32 = arith.constant 0 : i32
    %c0_i32_0 = arith.constant 0 : i32
    %c0_i32_1 = arith.constant 0 : i32
    return %arg0, %c0_i32, %c0_i32_0 : i32, i32, i32
  }
  func.func @transform_1(%arg0: i32) -> (i32, i32, i32) {
    %c0_i32 = arith.constant 0 : i32
    %c0_i32_0 = arith.constant 0 : i32
    %c0_i32_1 = arith.constant 0 : i32
    return %arg0, %c0_i32, %c0_i32_0 : i32, i32, i32
  }
  func.func @transform_2(%arg0: i32) -> (i32, i32) {
    %c0_i32 = arith.constant 0 : i32
    %c0_i32_0 = arith.constant 0 : i32
    %c0_i32_1 = arith.constant 0 : i32
    return %c0_i32, %c0_i32_0 : i32, i32
  }
  func.func @transform_3(%arg0: i32) -> (i32, i32) {
    %c0_i32 = arith.constant 0 : i32
    %c0_i32_0 = arith.constant 0 : i32
    %c0_i32_1 = arith.constant 0 : i32
    return %c0_i32, %c0_i32_0 : i32, i32
  }
  func.func @transform_4(%arg0: i32) -> (i32, i32) {
    %c0_i32 = arith.constant 0 : i32
    %c0_i32_0 = arith.constant 0 : i32
    %c0_i32_1 = arith.constant 0 : i32
    return %c0_i32, %c0_i32_0 : i32, i32
  }
  func.func @transform_5(%arg0: i32) -> (i32, i32) {
    %c0_i32 = arith.constant 0 : i32
    %c0_i32_0 = arith.constant 0 : i32
    %c0_i32_1 = arith.constant 0 : i32
    return %c0_i32, %c0_i32_0 : i32, i32
  }
  func.func @transform_6(%arg0: i32) -> (i32, i32) {
    %c0_i32 = arith.constant 0 : i32
    %c0_i32_0 = arith.constant 0 : i32
    %c0_i32_1 = arith.constant 0 : i32
    return %c0_i32, %c0_i32_0 : i32, i32
  }
  func.func @transform_7(%arg0: i32) -> (i32, i32) {
    %c0_i32 = arith.constant 0 : i32
    %c0_i32_0 = arith.constant 0 : i32
    %c0_i32_1 = arith.constant 0 : i32
    return %c0_i32, %c0_i32_0 : i32, i32
  }
  func.func @transform_8(%arg0: i32) -> (i32, i32, i32) {
    %c0_i32 = arith.constant 0 : i32
    %c0_i32_0 = arith.constant 0 : i32
    %c0_i32_1 = arith.constant 0 : i32
    return %arg0, %c0_i32, %c0_i32_0 : i32, i32, i32
  }
}

</mosaic_0001>

<bundles_post_ra>
// kernel: tpu_custom_call.1
= control target key start
LH: loop header
LB: loop body
LE: loop exit
PB: predicated region body
PF: predicated region fallthrough
CT: control target
= control target key end

     0   :  { %13 = vsyncpa [#allocation3], 0  ;;  %s2022_s0 = inlined_call_operand.vmem [shape: f32[2,8,32], index: 0, kind: input, shape index: {}]   ;;  %s2023_s1 = inlined_call_operand.vmem [shape: f32[2,1,8], index: 1, kind: input, shape index: {}]   ;;  %s2024_s2 = inlined_call_operand.vmem [shape: f32[4,32], index: 2, kind: input, shape index: {}]   ;;  %s2025_s3 = inlined_call_operand.vmem [shape: bf16[32,96], index: 3, kind: input, shape index: {}]   ;;  %s2026_s4 = inlined_call_operand.vmem [shape: bf16[32,32], index: 4, kind: input, shape index: {}]   ;;  %s2027_s5 = inlined_call_operand.vmem [shape: bf16[96,64], index: 5, kind: input, shape index: {}]   ;;  %s2028_s6 = inlined_call_operand.vmem [shape: bf16[192,32], index: 6, kind: input, shape index: {}]   ;;  %s2029_s7 = inlined_call_operand.vmem [shape: f32[1,96], index: 7, kind: input, shape index: {}]   ;;  %s2030_s8 = inlined_call_operand.hbm [shape: f32[2,8,32], index: 8, kind: output, shape index: {}]  }
   0x1   :  { %15 = vsyncpa [#allocation3 + $0x1], 0  ;;  %s1717_s27 = smov 0   ;;  %s1719_s28 = smov 0  }
   0x2   :  { %s1721_s29 = smov 0   ;;  %s1723_s30 = smov 0  }
   0x3 LB: > { %s1738_s9 = sadd.s32 4294967295, %s1651_s30   ;;  %s1332_s10 = sadd.s32 4294967294, %s1651_s30   ;;  %s1651_s30 = sphi %s1723_s30, %s2036_s30   ;;  %s1647_s29 = sphi %s1721_s29, %s2035_s29   ;;  %s1643_s28 = sphi %s1719_s28, %s2034_s28   ;;  %s1639_s27 = sphi %s1717_s27, %s2033_s27  }
   0x4   : > { %s1742_s11 = sadd.s32 1, %s1651_s30   ;;  %s206_s12 = sadd.s32 1, %s1647_s29 }
   0x5   : > { %s203_s13 = ssub.s32 %s1651_s30, %s1742_s11  ;;  %p216_p0 = scmp.ne.s32.totalorder %s1647_s29, %s1643_s28 }
   0x6   : > { %p204_p1 = scmp.eq.s32.totalorder %s203_s13, 0  ;;  %p217_p2 = scmp.eq.s32.totalorder %s1738_s9, 1 }
   0x7   : > { %p222_p3 = scmp.ne.s32.totalorder %s1643_s28, %s1639_s27  ;;  %p223_p4 = scmp.eq.s32.totalorder %s1332_s10, 1 }
   0x8   : > { %s1753_s14 = scalar_select %p204_p1, %s1647_s29, %s206_s12  }
   0x9   : > { %p1755_p5 = por %p217_p2, %p216_p0  ;;  %p1759_p6 = por %p223_p4, %p222_p3 }
   0xa   : > { %p1335_p7 = scmp.ge.s32.totalorder %s1651_s30, 1  ;;  %p272_p8 = scmp.lt.s32.totalorder %s1651_s30, 3 }
   0xc   : > { %p273_p9 = pnand %p1335_p7, %p272_p8 }
   0xd   : > { %p308_p10 = scmp.lt.s32.totalorder (!%p273_p9), %s1738_s9, 1  ;;  %vm318_vm0 = vcmask (!%p273_p9), 261120   ;;  %v1543_v7 = vld [vmem:[%s2025_s3] sm:$0xff] (!%p273_p9)   ;;  %v1653_v8 = vmov (!%p273_p9), 0.0   ;;  %vm1654_vm1 = vmmov (!%p273_p9), 0   ;;  %v1544_v9 = vld [vmem:[%s2025_s3 + $0x8] sm:$0xff] (!%p273_p9)   ;;  %v341_v17 = vlaneseq (!%p273_p9) }
   0xe   : > { %276 = sbr.rel (%p273_p9) target bundleno = 2843 (0xb1b), region = 52  ;;  %1406 = vmatprep.subr.bf16.mxu0 (!%p273_p9), %v1653_v8  ;;  %1410 = vmatprep.mubr.msk.bf16.mxu0 (!%p273_p9), %vm1654_vm1, %v1653_v8  ;;  %v1799_v21 = vld [vmem:[%s2024_s2] sm:$0xf] (!%p273_p9)  ;;  %s1655_s12 = smov (!%p273_p9), 120   ;;  %vm423_vm4 = vcmask (!%p273_p9), 64512   ;;  %vm487_vm5 = vcmask (!%p273_p9), 1043456  }
   0xf   : > { %1407 = vmatpush3.bf16.msra.mxu0 (!%p273_p9), %v1543_v7  ;;  %1426 = vmatprep.subr.bf16.mxu1 (!%p273_p9), %v1653_v8  ;;  %v1793_v19 = vshrl.u32 (!%p273_p9), %v341_v17, 7  ;;  %s1656_s13 = smov (!%p273_p9), 96   ;;  %s1658_s19 = smov (!%p273_p9), 80   ;;  %vm874_vm6 = vcmask (!%p273_p9), 130048   ;;  %vm876_vm7 = vcmask (!%p273_p9), 195584   ;;  %vm992_vm12 = vcmask (!%p273_p9), 523264  }
  0x10   : > { %1408 = vmatprep.subr.bf16.mxu0 (!%p273_p9), %v1653_v8  ;;  %1428 = vmatprep.mubr.msk.bf16.mxu1 (!%p273_p9), %vm1654_vm1, %v1653_v8  ;;  %s1659_s20 = smov (!%p273_p9), 112   ;;  %s1661_s22 = smov (!%p273_p9), 104   ;;  %vm1049_vm13 = vcmask (!%p273_p9), 785408  }
  0x11   : > { %v343_v20 = vsub.s32 (!%p273_p9), 0, %v1793_v19  ;;  %v348_v22 = vsub.s32 (!%p273_p9), 1, %v1793_v19  ;;  %s1663_s26 = smov (!%p273_p9), 56   ;;  %s1664_s10 = smov (!%p273_p9), 48   ;;  %vm973_vm10 = vcmp.ne.s32.totalorder (!%p273_p9), %v1793_v19, 7  ;;  %vm972_vm11 = vcmp.ne.s32.totalorder (!%p273_p9), %v1793_v19, 0 }
  0x12   : > { %s1668_s23 = smov (!%p273_p9), 24   ;;  %s1669_s24 = smov (!%p273_p9), 32  }
  0x13   : > { %1409 = vmatpush3.bf16.msra.mxu0 (!%p273_p9), %v1544_v9  ;;  %v344_v23 = vrot.slane (!%p273_p9), %v1799_v21, %v343_v20  ;;  %v349_v26 = vrot.slane (!%p273_p9), %v1799_v21, %v348_v22 }
  0x14   : > { %1414 = vmatprep.subr.bf16.mxu0 (!%p273_p9), %v1653_v8 }
  0x15   : > { %s1767_s17 = scalar_select %p308_p10, %s1738_s9, 1 }
  0x17   : > { %s1337_s18 = sshll.u32 %s1767_s17, 3  ;;  %s314_s25 = scalar_lea.vmem %s2023_s1, %s1767_s17 }
  0x18   : > { %s311_s21 = scalar_lea.vmem %s2022_s0, %s1337_s18  ;;  %s1657_s18 = smov 88   ;;  %v411_v46 = vld [vmem:[%s314_s25] sm:$0x1] }
  0x19   : > { %v1773_v0 = vld [vmem:[%s311_s21] sm:$0xff]  ;;  %s1660_s21 = smov 72   ;;  %v412_v47 = vmul.f32 -1e+18, %v411_v46  ;;  %s1662_s17 = smov 64  }
  0x1a   : > { %v319_v1 = vsel %vm318_vm0, %v1773_v0, 0.0 }
  0x1b   : > { %320 = vadd.xlane.f32.xlu0 %v319_v1  ;;  %v418_v48 = vrot.slane %v412_v47, %v343_v20 }
  0xa8   : > { %v321_v2 = vpop.xlane.xlu0 %320 }
  0xa9   : > { %v323_v3 = vmul.f32 0.03125, %v321_v2 }
  0xab   : > { %v324_v4 = vsub.f32 %v1773_v0, %v323_v3 }
  0xad   : > { %v325_v5 = vmul.f32 %v324_v4, %v324_v4 }
  0xaf   : > { %v326_v6 = vsel %vm318_vm0, %v325_v5, 0.0 }
  0xb0   : > { %327 = vadd.xlane.f32.xlu0 %v326_v6 }
 0x13d   : > { %v328_v10 = vpop.xlane.xlu0 %327 }
 0x13e   : > { %v329_v11 = vmul.f32 0.032258064, %v328_v10 }
 0x140   : > { %1565 = vrsqrt.f32 %v329_v11  ;;  %vm332_vm2 = vcmp.eq.f32.partialorder %v329_v11, inf  ;;  %v335_v14 = vand.u32 2147483648, %v329_v11  ;;  %vm334_vm3 = vcmp.eq.f32.partialorder %v329_v11, 0.0 }
 0x14a   : > { %v1566_v12 = vpop.eup %1565 }
 0x14b   : > { %v331_v13 = vmul.f32 %v1566_v12, %v329_v11 }
 0x14d   : > { %v333_v15 = vsel %vm332_vm2, %v329_v11, %v331_v13 }
 0x14e   : > { %v336_v16 = vsel %vm334_vm3, %v335_v14, %v333_v15 }
 0x14f   : > { %v337_v18 = vadd.f32 1e-06, %v336_v16 }
 0x151   : > { %1567 = vrcp.f32 %v337_v18 }
 0x15b   : > { %v1568_v24 = vpop.eup %1567 }
 0x15c   : > { %v340_v25 = vmul.f32 %v1568_v24, %v324_v4 }
 0x15e   : > { %v345_v27 = vmul.f32 %v344_v23, %v340_v25 }
 0x160   : > { %v350_v28 = vadd.f32 %v349_v26, %v345_v27 }
 0x162   : > { %v351_v29 = vpack.c.bf16 %v350_v28, %v350_v28 }
 0x164   : > { %1411 = vmatmul.mubr.msk.bf16.vlgmr.msra.gmra.mrb[0].mxu0 %vm318_vm0, %v351_v29 }
 0x165   : > { %1416 = vmatprep.mubr.msk.bf16.mxu0 %vm1654_vm1, %v1653_v8 }
 0x237   : > { %v405_v30 = vpop.f32.mrb[0].mxu0 }
 0x238   : > { %v1807_v31 = vpack.c.bf16 %v405_v30, %v405_v30  ;;  %v1412_v32 = vpop.f32.mrb[1].mxu0 }
 0x239   : > { %v408_v33 = vpop.f32.mrb[2].mxu0 }
 0x23a   : > { %531 = vrot.lane.b32.xlu0 %v1807_v31, %s1655_s12  ;;  %421 = vrot.lane.b32.xlu1 %v1807_v31, %s1656_s13  ;;  %v1413_v34 = vpop.f32.mrb[3].mxu0  ;;  %s1665_s12 = smov 40   ;;  %s1666_s13 = smov 8  }
 0x23e   : > { %533 = vrot.lane.b32.xlu1 %v1807_v31, %s1657_s18 }
 0x242   : > { %643 = vrot.lane.b32.xlu1 %v1807_v31, %s1658_s19 }
 0x246   : > { %641 = vrot.lane.b32.xlu1 %v1807_v31, %s1659_s20 }
 0x24a   : > { %753 = vrot.lane.b32.xlu1 %v1807_v31, %s1660_s21 }
 0x24e   : > { %751 = vrot.lane.b32.xlu1 %v1807_v31, %s1661_s22  ;;  %s1667_s22 = smov 16  }
 0x2ac   : > { %v422_v35 = vpop.permute.xlu1 %421  ;;  %v532_v40 = vpop.permute.xlu0 %531 }
 0x2ad   : > { %v428_v36 = vsel %vm423_vm4, %v422_v35, 0 }
 0x2ae   : > { %1415 = vmatpush3.bf16.xpose.msra.mxu0 %v428_v36 }
 0x2af   : > { %1420 = vmatprep.subr.bf16.mxu0 %v1653_v8 }
 0x2b0   : > { %v534_v37 = vpop.permute.xlu1 %533 }
 0x2b1   : > { %v539_v38 = vsel %vm423_vm4, %v534_v37, 0 }
 0x2b2   : > { %1427 = vmatpush3.bf16.xpose.msra.mxu1 %v539_v38 }
 0x2b3   : > { %1438 = vmatprep.subr.bf16.mxu1 %v1653_v8 }
 0x2b4   : > { %v644_v39 = vpop.permute.xlu1 %643 }
 0x2b5   : > { %1417 = vmatmul.mubr.msk.bf16.vlgmr.msra.gmra.mrb[4].mxu0 %vm423_vm4, %v1807_v31  ;;  %v649_v42 = vsel %vm423_vm4, %v644_v39, 0 }
 0x2b6   : > { %1422 = vmatprep.mubr.msk.bf16.mxu0 %vm1654_vm1, %v1653_v8 }
 0x2b8   : > { %v642_v41 = vpop.permute.xlu1 %641 }
 0x2b9   : > { %1429 = vmatmul.mubr.msk.bf16.vlgmr.msra.gmra.mrb[0].mxu1 %vm423_vm4, %v532_v40 }
 0x2ba   : > { %1439 = vmatpush3.bf16.xpose.msra.mxu1 %v649_v42  ;;  %1440 = vmatprep.mubr.msk.bf16.mxu1 %vm1654_vm1, %v1653_v8 }
 0x2bb   : > { %1450 = vmatprep.subr.bf16.mxu1 %v1653_v8 }
 0x2bc   : > { %v754_v43 = vpop.permute.xlu1 %753 }
 0x2bd   : > { %v759_v44 = vsel %vm423_vm4, %v754_v43, 0 }
 0x2c0   : > { %v752_v45 = vpop.permute.xlu1 %751 }
 0x2c1   : > { %1441 = vmatmul.mubr.msk.bf16.vlgmr.msra.gmra.mrb[4].mxu1 %vm423_vm4, %v642_v41 }
 0x2c2   : > { %1451 = vmatpush3.bf16.xpose.msra.mxu1 %v759_v44  ;;  %1452 = vmatprep.mubr.msk.bf16.mxu1 %vm1654_vm1, %v1653_v8 }
 0x2c3   : > { %1462 = vmatprep.subr.bf16.mxu1 %v1653_v8 }
 0x2c9   : > { %1453 = vmatmul.mubr.msk.bf16.vlgmr.msra.gmra.mrb[8].mxu1 %vm423_vm4, %v752_v45 }
 0x2ca   : > { %1466 = vmatprep.mubr.msk.bf16.mxu1 %vm1654_vm1, %v1653_v8 }
 0x388   : > { %v464_v49 = vpop.f32.mrb[4].mxu0 }
 0x389   : > { %v465_v50 = vadd.f32 %v464_v49, %v418_v48  ;;  %v1418_v51 = vpop.f32.mrb[5].mxu0 }
 0x38a   : > { %v467_v52 = vpop.f32.mrb[6].mxu0 }
 0x38b   : > { %v1419_v53 = vpop.f32.mrb[7].mxu0  ;;  %v470_v54 = vsel %vm423_vm4, %v465_v50, -inf }
 0x38c   : > { %v575_v55 = vpop.f32.mrb[0].mxu1  ;;  %471 = vmax.xlane.f32.xlu1 %v470_v54 }
 0x38d   : > { %v576_v56 = vadd.f32 %v575_v55, %v418_v48  ;;  %v1430_v57 = vpop.f32.mrb[1].mxu1 }
 0x38e   : > { %v578_v58 = vpop.f32.mrb[2].mxu1 }
 0x38f   : > { %v1431_v59 = vpop.f32.mrb[3].mxu1  ;;  %v581_v60 = vsel %vm423_vm4, %v576_v56, -inf }
 0x390   : > { %582 = vmax.xlane.f32.xlu0 %v581_v60 }
 0x394   : > { %v685_v61 = vpop.f32.mrb[4].mxu1 }
 0x395   : > { %v686_v62 = vadd.f32 %v685_v61, %v418_v48  ;;  %v1442_v63 = vpop.f32.mrb[5].mxu1 }
 0x396   : > { %v688_v1 = vpop.f32.mrb[6].mxu1 }
 0x397   : > { %v1443_v2 = vpop.f32.mrb[7].mxu1  ;;  %v691_v3 = vsel %vm423_vm4, %v686_v62, -inf }
 0x398   : > { %692 = vmax.xlane.f32.xlu1 %v691_v3  ;;  %v1545_v2 = vld [vmem:[%s2026_s4] sm:$0xff]   ;;  %v1546_v3 = vld [vmem:[%s2026_s4 + $0x8] sm:$0xff]  }
 0x399   : > { %1463 = vmatpush3.bf16.msra.mxu1 %v1545_v2  ;;  %v1555_v2 = vld [vmem:[%s2028_s6 + $0x10] sm:$0xff]  }
 0x39a   : > { %1464 = vmatprep.subr.bf16.mxu1 %v1653_v8 }
 0x39c   : > { %v795_v4 = vpop.f32.mrb[8].mxu1 }
 0x39d   : > { %v796_v5 = vadd.f32 %v795_v4, %v418_v48  ;;  %v1454_v6 = vpop.f32.mrb[9].mxu1  ;;  %1465 = vmatpush3.bf16.msra.mxu1 %v1546_v3  ;;  %v1556_v3 = vld [vmem:[%s2028_s6 + $0x18] sm:$0xff]  }
 0x39e   : > { %v798_v7 = vpop.f32.mrb[10].mxu1 }
 0x39f   : > { %v1455_v9 = vpop.f32.mrb[11].mxu1  ;;  %v801_v10 = vsel %vm423_vm4, %v796_v5, -inf }
 0x3a0   : > { %802 = vmax.xlane.f32.xlu0 %v801_v10 }
 0x419   : > { %v472_v11 = vpop.xlane.xlu1 %471 }
 0x41a   : > { %v473_v12 = vsub.f32 %v465_v50, %v472_v11 }
 0x41c   : > { %v474_v13 = vmul.f32 1.442695, %v473_v12 }
 0x41d   : > { %v583_v14 = vpop.xlane.xlu0 %582 }
 0x41e   : > { %1569 = vpow2.f32 %v474_v13  ;;  %v584_v15 = vsub.f32 %v576_v56, %v583_v14 }
 0x420   : > { %v585_v16 = vmul.f32 1.442695, %v584_v15 }
 0x422   : > { %1571 = vpow2.f32 %v585_v16 }
 0x425   : > { %v693_v28 = vpop.xlane.xlu1 %692 }
 0x426   : > { %v694_v29 = vsub.f32 %v686_v62, %v693_v28 }
 0x428   : > { %v1570_v17 = vpop.eup %1569  ;;  %v695_v30 = vmul.f32 1.442695, %v694_v29 }
 0x429   : > { %v476_v18 = vsel %vm423_vm4, %v1570_v17, 0.0 }
 0x42a   : > { %477 = vadd.xlane.f32.xlu1 %v476_v18 }
 0x42c   : > { %v1572_v20 = vpop.eup %1571 }
 0x42d   : > { %v803_v22 = vpop.xlane.xlu0 %802  ;;  %v587_v23 = vsel %vm423_vm4, %v1572_v20, 0.0 }
 0x42e   : > { %v804_v24 = vsub.f32 %v796_v5, %v803_v22  ;;  %588 = vadd.xlane.f32.xlu0 %v587_v23 }
 0x430   : > { %v805_v25 = vmul.f32 1.442695, %v804_v24 }
 0x432   : > { %1573 = vpow2.f32 %v805_v25 }
 0x433   : > { %1575 = vpow2.f32 %v695_v30 }
 0x43b   : > { %482 = vrot.lane.b32.xlu1 %v1807_v31, %s1662_s17 }
 0x43c   : > { %v1574_v26 = vpop.eup %1573 }
 0x43d   : > { %v807_v27 = vsel %vm423_vm4, %v1574_v26, 0.0  ;;  %v1576_v32 = vpop.eup %1575 }
 0x43e   : > { %808 = vadd.xlane.f32.xlu0 %v807_v27  ;;  %v697_v33 = vsel %vm423_vm4, %v1576_v32, 0.0 }
 0x454   : > { %593 = vrot.lane.b32.xlu0 %v1807_v31, %s1663_s26 }
 0x45f   : > { %698 = vadd.xlane.f32.xlu1 %v697_v33 }
 0x470   : > { %703 = vrot.lane.b32.xlu1 %v1807_v31, %s1664_s10  ;;  %s305_s10 = sand.u32 1, %s1643_s28  }
 0x474   : > { %813 = vrot.lane.b32.xlu1 %v1807_v31, %s1665_s12  ;;  %s1336_s12 = sshll.u32 %s305_s10, 3 }
 0x4b7   : > { %v478_v34 = vpop.xlane.xlu1 %477 }
 0x4b8   : > { %1577 = vrcp.f32 %v478_v34  ;;  %v1548_v34 = vld [vmem:[%s2027_s5 + $0x8] sm:$0xff]  }
 0x4bb   : > { %v483_v35 = vpop.permute.xlu1 %482  ;;  %v589_v37 = vpop.xlane.xlu0 %588 }
 0x4bc   : > { %v489_v36 = vsel %vm487_vm5, %v483_v35, 0  ;;  %1579 = vrcp.f32 %v589_v37  ;;  %v1549_v35 = vld [vmem:[%s2027_s5 + $0x10] sm:$0xff]   ;;  %v1551_v37 = vld [vmem:[%s2027_s5 + $0x20] sm:$0xff]  }
 0x4bd   : > { %1421 = vmatpush3.bf16.msra.mxu0 %v489_v36  ;;  %v1550_v36 = vld [vmem:[%s2027_s5 + $0x18] sm:$0xff]  }
 0x4be   : > { %1432 = vmatprep.subr.bf16.mxu0 %v1653_v8 }
 0x4c2   : > { %v1578_v38 = vpop.eup %1577 }
 0x4c3   : > { %v480_v39 = vmul.f32 %v1578_v38, %v1570_v17 }
 0x4c5   : > { %v481_v40 = vpack.c.bf16 %v480_v39, %v480_v39 }
 0x4c6   : > { %v1580_v31 = vpop.eup %1579 }
 0x4c7   : > { %1423 = vmatmul.mubr.msk.bf16.vlgmr.msra.gmra.mrb[8].mxu0 %vm423_vm4, %v481_v40  ;;  %v591_v42 = vmul.f32 %v1580_v31, %v1572_v20 }
 0x4c8   : > { %1434 = vmatprep.mubr.msk.bf16.mxu0 %vm1654_vm1, %v1653_v8 }
 0x4c9   : > { %v592_v45 = vpack.c.bf16 %v591_v42, %v591_v42 }
 0x4cb   : > { %v809_v41 = vpop.xlane.xlu0 %808 }
 0x4cf   : > { %v594_v43 = vpop.permute.xlu0 %593 }
 0x4d0   : > { %v599_v44 = vsel %vm487_vm5, %v594_v43, 0 }
 0x4d1   : > { %1433 = vmatpush3.bf16.msra.mxu0 %v599_v44 }
 0x4d2   : > { %1444 = vmatprep.subr.bf16.mxu0 %v1653_v8 }
 0x4d4   : > { %1435 = vmatmul.mubr.msk.bf16.vlgmr.msra.gmra.mrb[12].mxu0 %vm423_vm4, %v592_v45  ;;  %v962_v45 = vsub.s32 2, %v1793_v19 }
 0x4d5   : > { %1446 = vmatprep.mubr.msk.bf16.mxu0 %vm1654_vm1, %v1653_v8 }
 0x4ec   : > { %v699_v46 = vpop.xlane.xlu1 %698 }
 0x4ed   : > { %1581 = vrcp.f32 %v699_v46  ;;  %v1552_v46 = vld [vmem:[%s2027_s5 + $0x28] sm:$0xff]  }
 0x4ee   : > { %1583 = vrcp.f32 %v809_v41 }
 0x4f0   : > { %v704_v47 = vpop.permute.xlu1 %703 }
 0x4f1   : > { %v709_v48 = vsel %vm487_vm5, %v704_v47, 0  ;;  %v963_v47 = vrot.slane %v1799_v21, %v962_v45 }
 0x4f2   : > { %1445 = vmatpush3.bf16.msra.mxu0 %v709_v48 }
 0x4f3   : > { %1456 = vmatprep.subr.bf16.mxu0 %v1653_v8 }
 0x4f4   : > { %v814_v51 = vpop.permute.xlu1 %813 }
 0x4f5   : > { %v819_v54 = vsel %vm487_vm5, %v814_v51, 0 }
 0x4f7   : > { %v1582_v49 = vpop.eup %1581 }
 0x4f8   : > { %v701_v50 = vmul.f32 %v1582_v49, %v1576_v32  ;;  %v1584_v53 = vpop.eup %1583 }
 0x4f9   : > { %v811_v55 = vmul.f32 %v1584_v53, %v1574_v26 }
 0x4fa   : > { %v702_v52 = vpack.c.bf16 %v701_v50, %v701_v50 }
 0x4fb   : > { %v812_v56 = vpack.c.bf16 %v811_v55, %v811_v55  ;;  %v1352_v55 = vld [vmem:[%s2029_s7] ss:$0 sm:$0xff] }
 0x4fc   : > { %1447 = vmatmul.mubr.msk.bf16.vlgmr.msra.gmra.mrb[16].mxu0 %vm423_vm4, %v702_v52 }
 0x4fd   : > { %1457 = vmatpush3.bf16.msra.mxu0 %v819_v54  ;;  %1458 = vmatprep.mubr.msk.bf16.mxu0 %vm1654_vm1, %v1653_v8 }
 0x4fe   : > { %1470 = vmatprep.subr.bf16.mxu0 %v1653_v8 }
 0x504   : > { %1459 = vmatmul.mubr.msk.bf16.vlgmr.msra.gmra.mrb[20].mxu0 %vm423_vm4, %v812_v56 }
 0x505   : > { %1482 = vmatprep.mubr.msk.bf16.mxu0 %vm1654_vm1, %v1653_v8 }
 0x59a   : > { %v525_v57 = vpop.f32.mrb[8].mxu0 }
 0x59b   : > { %v1424_v58 = vpop.f32.mrb[9].mxu0 }
 0x59c   : > { %v528_v59 = vpop.f32.mrb[10].mxu0 }
 0x59d   : > { %v1425_v60 = vpop.f32.mrb[11].mxu0 }
 0x5a7   : > { %v635_v61 = vpop.f32.mrb[12].mxu0 }
 0x5a8   : > { %862 = vrot.lane.b32.xlu0 %v635_v61, %s1666_s13  ;;  %v1436_v62 = vpop.f32.mrb[13].mxu0  ;;  %s307_s13 = scalar_lea.vmem [#allocation2], %s1336_s12 }
 0x5a9   : > { %v638_v63 = vpop.f32.mrb[14].mxu0  ;;  %v1553_v62 = vld [vmem:[%s2028_s6] sm:$0xff]   ;;  %s1264_s18 = sshll.u32 %s307_s13, 4  ;;  %s1981_s18 = int_to_ptr.vmem [resolvable:$true] %s1264_s18 }
 0x5aa   : > { %v1437_v1 = vpop.f32.mrb[15].mxu0  ;;  %v1670_v63 = vmov 0  }
 0x5ab   : > { %1207 = vmatprep.subr.bf16.mxu1 %v1670_v63  ;;  %v1554_v1 = vld [vmem:[%s2028_s6 + $0x8] sm:$0xff]  }
 0x5cf   : > { %v745_v4 = vpop.f32.mrb[16].mxu0 }
 0x5d0   : > { %866 = vrot.lane.b32.xlu1 %v745_v4, %s1667_s22  ;;  %v1448_v5 = vpop.f32.mrb[17].mxu0  ;;  %v1557_v4 = vld [vmem:[%s2028_s6 + $0x20] sm:$0xff]   ;;  %s1251_s22 = scalar_lea.sflag [#allocation3], %s305_s10 }
 0x5d1   : > { %v748_v6 = vpop.f32.mrb[18].mxu0  ;;  %v1558_v5 = vld [vmem:[%s2028_s6 + $0x28] sm:$0xff]  }
 0x5d2   : > { %v1449_v7 = vpop.f32.mrb[19].mxu0  ;;  %v1559_v6 = vld [vmem:[%s2028_s6 + $0x30] sm:$0xff]  }
 0x5d3   : > { %v1560_v7 = vld [vmem:[%s2028_s6 + $0x38] sm:$0xff]  }
 0x5d7   : > { %v855_v9 = vpop.f32.mrb[20].mxu0 }
 0x5d8   : > { %870 = vrot.lane.b32.xlu0 %v855_v9, %s1668_s23  ;;  %v1460_v10 = vpop.f32.mrb[21].mxu0  ;;  %v1561_v9 = vld [vmem:[%s2028_s6 + $0x40] sm:$0xff]   ;;  %s1671_s23 = smov [#allocation2]  }
 0x5d9   : > { %v858_v11 = vpop.f32.mrb[22].mxu0  ;;  %v1562_v10 = vld [vmem:[%s2028_s6 + $0x48] sm:$0xff]  }
 0x5da   : > { %v1461_v12 = vpop.f32.mrb[23].mxu0  ;;  %v1563_v11 = vld [vmem:[%s2028_s6 + $0x50] sm:$0xff]  }
 0x5db   : > { %v1564_v12 = vld [vmem:[%s2028_s6 + $0x58] sm:$0xff]  }
 0x61a   : > { %v863_v13 = vpop.permute.xlu0 %862 }
 0x61b   : > { %v873_v15 = vsel %vm423_vm4, %v525_v57, %v863_v13 }
 0x642   : > { %v867_v14 = vpop.permute.xlu1 %866 }
 0x643   : > { %v875_v16 = vsel %vm874_vm6, %v873_v15, %v867_v14 }
 0x64a   : > { %v871_v17 = vpop.permute.xlu0 %870 }
 0x64b   : > { %v877_v18 = vsel %vm876_vm7, %v875_v16, %v871_v17 }
 0x64c   : > { %v878_v20 = vpack.c.bf16 %v877_v18, %v877_v18 }
 0x64e   : > { %1467 = vmatmul.mubr.msk.bf16.vlgmr.msra.gmra.mrb[12].mxu1 %vm318_vm0, %v878_v20 }
 0x64f   : > { %1208 = vmatpush1.bf16.msra.mxu1 %v1553_v62 }
 0x650   : > { %1209 = vmatprep.subr.bf16.mxu1 %v1670_v63 }
 0x653   : > { %1210 = vmatpush1.bf16.msra.mxu1 %v1554_v1 }
 0x654   : > { %1211 = vmatprep.subr.bf16.mxu1 %v1670_v63 }
 0x657   : > { %1212 = vmatpush1.bf16.msra.mxu1 %v1555_v2 }
 0x658   : > { %1213 = vmatprep.subr.bf16.mxu1 %v1670_v63 }
 0x65b   : > { %1214 = vmatpush1.bf16.msra.mxu1 %v1556_v3 }
 0x65c   : > { %1215 = vmatprep.subr.bf16.mxu1 %v1670_v63 }
 0x65f   : > { %1216 = vmatpush1.bf16.msra.mxu1 %v1557_v4 }
 0x660   : > { %1217 = vmatprep.subr.bf16.mxu1 %v1670_v63 }
 0x663   : > { %1218 = vmatpush1.bf16.msra.mxu1 %v1558_v5 }
 0x664   : > { %1219 = vmatprep.subr.bf16.mxu1 %v1670_v63 }
 0x667   : > { %1220 = vmatpush1.bf16.msra.mxu1 %v1559_v6 }
 0x668   : > { %1221 = vmatprep.subr.bf16.mxu1 %v1670_v63 }
 0x66b   : > { %1222 = vmatpush1.bf16.msra.mxu1 %v1560_v7 }
 0x66c   : > { %1223 = vmatprep.subr.bf16.mxu1 %v1670_v63 }
 0x66f   : > { %1224 = vmatpush1.bf16.msra.mxu1 %v1561_v9 }
 0x670   : > { %1225 = vmatprep.subr.bf16.mxu1 %v1670_v63 }
 0x673   : > { %1226 = vmatpush1.bf16.msra.mxu1 %v1562_v10 }
 0x674   : > { %1227 = vmatprep.subr.bf16.mxu1 %v1670_v63 }
 0x677   : > { %1228 = vmatpush1.bf16.msra.mxu1 %v1563_v11 }
 0x678   : > { %1229 = vmatprep.subr.bf16.mxu1 %v1670_v63 }
 0x67b   : > { %1230 = vmatpush1.bf16.msra.mxu1 %v1564_v12 }
 0x721   : > { %v932_v22 = vpop.f32.mrb[12].mxu1 }
 0x722   : > { %v1884_v23 = vadd.f32 %v932_v22, %v1773_v0  ;;  %v1468_v24 = vpop.f32.mrb[13].mxu1  ;;  %v1547_v0 = vld [vmem:[%s2027_s5] sm:$0xff]  }
 0x723   : > { %v935_v25 = vpop.f32.mrb[14].mxu1  ;;  %1471 = vmatpush3.bf16.msra.mxu0 %v1547_v0 }
 0x724   : > { %v1469_v26 = vpop.f32.mrb[15].mxu1  ;;  %v939_v27 = vsel %vm318_vm0, %v1884_v23, 0.0  ;;  %1472 = vmatprep.subr.bf16.mxu0 %v1653_v8 }
 0x725   : > { %940 = vadd.xlane.f32.xlu1 %v939_v27 }
 0x727   : > { %1473 = vmatpush3.bf16.msra.mxu0 %v1548_v34 }
 0x728   : > { %1474 = vmatprep.subr.bf16.mxu0 %v1653_v8 }
 0x72b   : > { %1475 = vmatpush3.bf16.msra.mxu0 %v1549_v35 }
 0x72c   : > { %1476 = vmatprep.subr.bf16.mxu0 %v1653_v8 }
 0x72f   : > { %1477 = vmatpush3.bf16.msra.mxu0 %v1550_v36 }
 0x730   : > { %1478 = vmatprep.subr.bf16.mxu0 %v1653_v8 }
 0x733   : > { %1479 = vmatpush3.bf16.msra.mxu0 %v1551_v37 }
 0x734   : > { %1480 = vmatprep.subr.bf16.mxu0 %v1653_v8  ;;  %v967_v8 = vsub.s32 3, %v1793_v19 }
 0x736   : > { %v968_v50 = vrot.slane %v1799_v21, %v967_v8 }
 0x737   : > { %1481 = vmatpush3.bf16.msra.mxu0 %v1552_v46 }
 0x7b2   : > { %v941_v28 = vpop.xlane.xlu1 %940 }
 0x7b3   : > { %v942_v29 = vmul.f32 0.03125, %v941_v28 }
 0x7b5   : > { %v943_v30 = vsub.f32 %v1884_v23, %v942_v29 }
 0x7b7   : > { %v944_v32 = vmul.f32 %v943_v30, %v943_v30 }
 0x7b9   : > { %v945_v33 = vsel %vm318_vm0, %v944_v32, 0.0 }
 0x7ba   : > { %946 = vadd.xlane.f32.xlu0 %v945_v33 }
 0x847   : > { %v947_v38 = vpop.xlane.xlu0 %946 }
 0x848   : > { %v948_v39 = vmul.f32 0.032258064, %v947_v38 }
 0x84a   : > { %1585 = vrsqrt.f32 %v948_v39  ;;  %vm951_vm8 = vcmp.eq.f32.partialorder %v948_v39, inf  ;;  %v954_v41 = vand.u32 2147483648, %v948_v39  ;;  %vm953_vm9 = vcmp.eq.f32.partialorder %v948_v39, 0.0 }
 0x854   : > { %v1586_v40 = vpop.eup %1585 }
 0x855   : > { %v950_v31 = vmul.f32 %v1586_v40, %v948_v39 }
 0x857   : > { %v952_v42 = vsel %vm951_vm8, %v948_v39, %v950_v31 }
 0x858   : > { %v955_v43 = vsel %vm953_vm9, %v954_v41, %v952_v42 }
 0x859   : > { %v956_v44 = vadd.f32 1e-06, %v955_v43 }
 0x85b   : > { %1587 = vrcp.f32 %v956_v44 }
 0x865   : > { %v1588_v48 = vpop.eup %1587 }
 0x866   : > { %v959_v49 = vmul.f32 %v1588_v48, %v943_v30 }
 0x868   : > { %v964_v51 = vmul.f32 %v963_v47, %v959_v49 }
 0x86a   : > { %v969_v52 = vadd.f32 %v968_v50, %v964_v51 }
 0x86c   : > { %984 = vrot.lane.b32.xlu0 %v969_v52, %s1669_s24  ;;  %v979_v53 = vrot.slane %v969_v52, 1  ;;  %v975_v56 = vrot.slane %v969_v52, 7  ;;  %s1593_s24 = sshll.u32 %s1671_s23, 4  ;;  %s1594_s24 = int_to_ptr.vmem [resolvable:$false] %s1593_s24 }
 0x86d   : > { %s1595_s25 = scalar_lea.vmem %s1594_s24, 256  ;;  %p1596_p0 = scmp.lt.s32.totalorder %s1981_s18, %s1594_s24 }
 0x86e   : > { %v982_v54 = vsel %vm973_vm10, %v979_v53, 0.0  ;;  %v978_v57 = vsel %vm972_vm11, %v975_v56, 0.0 }
 0x86f   : > { %988 = vrot.lane.b32.xlu1 %v982_v54, %s1662_s17 }
 0x870   : > { %1201 = vrot.lane.b32.xlu0 %v1352_v55, %s1662_s17 }
 0x8de   : > { %v985_v21 = vpop.permute.xlu0 %984 }
 0x8df   : > { %v991_v58 = vsel %vm318_vm0, %v978_v57, %v985_v21 }
 0x8e1   : > { %v989_v59 = vpop.permute.xlu1 %988 }
 0x8e2   : > { %v993_v60 = vsel %vm992_vm12, %v991_v58, %v989_v59  ;;  %v1202_v30 = vpop.permute.xlu0 %1201 }
 0x8e3   : > { %v994_v61 = vpack.c.bf16 %v993_v60, %v993_v60 }
 0x8e5   : > { %1483 = vmatmul.mubr.msk.bf16.vlgmr.msra.gmra.mrb[24].mxu0 %vm1049_vm13, %v994_v61 }
 0x9b8   : > { %v1087_v13 = vpop.f32.mrb[24].mxu0 }
 0x9b9   : > { %v1088_v14 = vadd.f32 %v1352_v55, %v1087_v13  ;;  %v1484_v15 = vpop.f32.mrb[25].mxu0 }
 0x9ba   : > { %v1090_v16 = vpop.f32.mrb[26].mxu0 }
 0x9bb   : > { %v1093_v17 = vmax.f32 %v1088_v14, 0.0  ;;  %v1485_v18 = vpop.f32.mrb[27].mxu0 }
 0x9bd   : > { %v1096_v20 = vrot.slane %v1093_v17, 1  ;;  %1099 = vrot.lane.b32.xlu1 %v1093_v17, %s1662_s17  ;;  %v1094_v25 = vrot.slane %v1093_v17, 7  ;;  %s1374_s17 = sshll.u32 %s1738_s9, 7  ;;  %s1589_s9 = scalar_lea.vmem %s1981_s18, 128 }
 0x9be   : > { %s1979_s21 = scalar_lea.hbm %s2030_s8, %s1374_s17  ;;  %p1590_p11 = scmp.ne.s32.totalorder %s1981_s18, %s1589_s9 }
 0x9bf   : > { %v1097_v22 = vsel %vm973_vm10, %v1096_v20, 0.0  ;;  %v1095_v27 = vsel %vm972_vm11, %v1094_v25, 0.0  ;;  %p1597_p1 = scmp.lt.s32.totalorder %s1595_s25, %s1589_s9 }
 0x9c0   : > { %v1104_v24 = vpack.c.bf16 %v1097_v22, %v1097_v22  ;;  %p1591_p12 = pnand %p1590_p11, %p1755_p5 }
 0x9c1   : > { %p1598_p2 = por %p1597_p1, %p1596_p0 }
 0x9c2   : > { %1372 = vmatprep.mubr.msk.bf16.mxu1 %vm992_vm12, %v1104_v24  ;;  %p1592_p13 = pneg %p1591_p12 }
 0x9c4   : > { %p1599_p3 = pnand %p1598_p2, %p1592_p13 }
 0xa2f   : > { %v1100_v26 = vpop.permute.xlu1 %1099 }
 0xa30   : > { %v1102_v28 = vsel %vm992_vm12, %v1095_v27, %v1100_v26 }
 0xa31   : > { %v1103_v29 = vpack.c.bf16 %v1102_v28, %v1102_v28 }
 0xa33   : > { %1240 = vmatmul.mubr.bf16.vlgmr.msra.gmra.mrb[16].mxu1 %v1103_v29 }
 0xb06   : > { %v1241_v32 = vpop.f32.mrb[16].mxu1 }
 0xb07   : > { %v1242_v33 = vadd.f32 %v1241_v32, %v1202_v30  ;;  %v1243_v0 = vpop.f32.mrb[17].mxu1 }
 0xb08   : > { %v1244_v34 = vpop.f32.mrb[18].mxu1 }
 0xb09   : > { %v1247_v35 = vmax.f32 %v1242_v33, 0.0  ;;  %v1245_v36 = vpop.f32.mrb[19].mxu1 }
 0xb0b   : > { %v1248_v19 = vadd.f32 %v1247_v35, %v1884_v23 }
 0xb0d   : > { %1249 = vst.msk [vmem:[%s307_s13] sm:$0xff] %vm318_vm0, %v1248_v19 }
 0xb0e   : > { %1602 = shalt.err (!%p1599_p3)
}
 0xb0f   : > { %s1603_s26 = scalar_lea.hbm %s1979_s21, 128  ;;  %s1607_s17 = scalar_lea.hbm %s2030_s8, 256 }
 0xb10   : > { %p1604_p4 = scmp.ne.s32.totalorder %s1979_s21, %s1603_s26  ;;  %p1608_p9 = scmp.lt.u32.totalorder %s1979_s21, %s2030_s8 }
 0xb11   : > { %p1609_p10 = scmp.lt.u32.totalorder %s1607_s17, %s1603_s26  ;;  %p1611_p12 = scmp.lt.u32.totalorder %s1603_s26, %s1979_s21 }
 0xb12   : > { %p1605_p7 = pnand %p1604_p4, %p1755_p5 }
 0xb13   : > { %p1610_p11 = por %p1609_p10, %p1608_p9 }
 0xb14   : > { %p1606_p8 = pneg %p1605_p7 }
 0xb15   : > { %p1612_p13 = por %p1611_p12, %p1610_p11 }
 0xb17   : > { %p1613_p0 = pnand %p1612_p13, %p1606_p8 }
 0xb19   : > { %1616 = shalt.err (!%p1613_p0)
}
 0xb1a   : > { %1486 = dma.vmem_to_hbm [thread:$0]  (%p1755_p5), %s1981_s18, 128, %s1979_s21, %s1251_s22  }
 0xb1b PF: > { %p1492_p1 = scmp.ge.s32.totalorder %s1651_s30, 2  ;;  %s1276_s20 = sand.u32 1, %s1639_s27  }
 0xb1c   : > { %s1277_s9 = scalar_lea.sflag [#allocation3], %s1276_s20 }
 0xb1d   : > { %p1489_p2 = pnand %p1492_p1, %p1759_p6 }
 0xb1f   : > { %1634 = dma.done.wait (!%p1489_p2), %s1277_s9, 128  }
 0xb20   : > { %1636 = vsyncadd (!%p1489_p2), %s1277_s9, 4294967168  ;;  %p18_p3 = scmp.ge.s32.totalorder %s1742_s11, 4   ;;  %s2033_s27 = smov %s1643_s28 }
 0xb21   : > { %s2034_s28 = smov %s1647_s29  ;;  %s2035_s29 = smov %s1753_s14 }
 0xb22   : > { %s2036_s30 = smov %s1742_s11  ;;  %20 = sbr.rel (!%p18_p3) target bundleno = 3 (0x3), region = 90 }
 0xb29   :  { %1282 = vsyncpa [#allocation3], 1 }
 0xb2a   :  { %1284 = vsyncpa [#allocation3 + $0x1], 1 }

</bundles_post_ra>
